<compile_context>
chip_gen: v6e
topology: v6e:2x2x1
jax: 0.10.0
libtpu: 0.0.40
codegen_flags: <defaults>
</compile_context>

<pallas_src>
import jax
import jax.numpy as jnp
from jax.experimental import pallas as pl
from jax.experimental.pallas import tpu as pltpu

# ----------------------------- config ---------------------------------------
NUM_USERS = 48
NUM_ITEMS = 80
N_NODES = NUM_USERS + NUM_ITEMS        # 128
LATENT_DIM = 64                        # logical latent dim (as in the module)
LANE = 128
D_PAD = ((LATENT_DIM + LANE - 1) // LANE) * LANE   # 128: lane-dense feature dim
N_LAYERS = 3
BATCH = 8


# ----------------------------- kernel ---------------------------------------
def lightgcn_fused_kernel(users_ref, items_ref,      # scalar-prefetch (SMEM)
                          graph_ref, emb_ref,        # inputs (VMEM)
                          emb_out_ref, scores_ref):  # outputs (VMEM)
    """computer() + forward() fused: propagate, gather, score."""
    # ---- propagation: mean over {E, G@E, ..., G^L @ E} -----------------------
    # bf16 MXU passes, f32 accumulation (layer-0 term stays exact f32).
    g = graph_ref[...].astype(jnp.bfloat16)                     # (N, N)
    cur = emb_ref[...]                                          # (N, D_PAD) f32
    acc = cur
    for _ in range(N_LAYERS):                                   # static unroll
        cur = jnp.dot(g, cur.astype(jnp.bfloat16),
                      preferred_element_type=jnp.float32)
        acc = acc + cur
    final = acc * (1.0 / (N_LAYERS + 1))
    emb_out_ref[...] = final                                    # lane-dense store

    # ---- fused gather + score from the VMEM-resident final embeddings -------
    lane = jax.lax.broadcasted_iota(jnp.int32, (1, BATCH), 1)
    s = jnp.zeros((1, BATCH), jnp.float32)
    for b in range(BATCH):                                      # BATCH is tiny
        u = users_ref[b]
        it = items_ref[b]
        ue = emb_out_ref[pl.ds(u, 1), :]                        # (1, D_PAD)
        ie = emb_out_ref[pl.ds(NUM_USERS + it, 1), :]           # (1, D_PAD)
        sb = jnp.sum(ue * ie, axis=1, keepdims=True)            # (1, 1)
        s = jnp.where(lane == b, sb, s)
    # sigmoid with the reciprocal on the EUP slot
    scores_ref[...] = pl.reciprocal(1.0 + jnp.exp(-s), approx=True)


# ----------------------------- wrapper --------------------------------------
def lightgcn_forward(graph, all_emb, users, items):
    """Equivalent of LightGCN.forward(users, items) -> (B,) sigmoid scores.

    Also returns the propagated (users, items) embeddings (computer())."""
    n, d = all_emb.shape
    emb_padded = jnp.pad(all_emb, ((0, 0), (0, D_PAD - d)))     # zero-pad lanes

    grid_spec = pltpu.PrefetchScalarGridSpec(
        num_scalar_prefetch=2,
        grid=(1,),
        in_specs=[
            pl.BlockSpec((N_NODES, N_NODES), lambda i, u, it: (0, 0)),
            pl.BlockSpec((N_NODES, D_PAD), lambda i, u, it: (0, 0)),
        ],
        out_specs=[
            pl.BlockSpec((N_NODES, D_PAD), lambda i, u, it: (0, 0)),
            pl.BlockSpec((1, BATCH), lambda i, u, it: (0, 0)),
        ],
    )

    final_padded, scores = pl.pallas_call(
        lightgcn_fused_kernel,
        out_shape=(
            jax.ShapeDtypeStruct((N_NODES, D_PAD), jnp.float32),
            jax.ShapeDtypeStruct((1, BATCH), jnp.float32),
        ),
        grid_spec=grid_spec,
        compiler_params=pltpu.CompilerParams(
            dimension_semantics=("arbitrary",)),
    )(users.astype(jnp.int32), items.astype(jnp.int32), graph, emb_padded)

    all_users = final_padded[:NUM_USERS, :d]
    all_items = final_padded[NUM_USERS:, :d]
    return scores[0], all_users, all_items


# ----------------------------- setup / reference -----------------------------
def build_graph(key):
    """Symmetrically-normalized bipartite adjacency (dense)."""
    r = (jax.random.uniform(key, (NUM_USERS, NUM_ITEMS)) < 0.1).astype(jnp.float32)
    top = jnp.concatenate([jnp.zeros((NUM_USERS, NUM_USERS)), r], axis=1)
    bot = jnp.concatenate([r.T, jnp.zeros((NUM_ITEMS, NUM_ITEMS))], axis=1)
    a = jnp.concatenate([top, bot], axis=0)                     # (N, N)
    deg = a.sum(axis=1)
    d_inv_sqrt = jnp.where(deg > 0, 1.0 / jnp.sqrt(deg), 0.0)
    return (d_inv_sqrt[:, None] * a * d_inv_sqrt[None, :]).astype(jnp.float32)


def reference_forward(graph, all_emb, users, items):
    cur = all_emb
    acc = cur
    for _ in range(N_LAYERS):
        cur = graph @ cur
        acc = acc + cur
    final = acc / (N_LAYERS + 1)
    u = final[:NUM_USERS][users]
    i = final[NUM_USERS:][items]
    return jax.nn.sigmoid(jnp.sum(u * i, axis=1))


# ----------------------------- main -----------------------------------------
if __name__ == "__main__":
    key = jax.random.PRNGKey(0)
    k_graph, k_user, k_item, k_uid, k_iid = jax.random.split(key, 5)

    graph = build_graph(k_graph)
    # nn.init.normal_(std=0.1) for both embedding tables
    user_emb = 0.1 * jax.random.normal(k_user, (NUM_USERS, LATENT_DIM), jnp.float32)
    item_emb = 0.1 * jax.random.normal(k_item, (NUM_ITEMS, LATENT_DIM), jnp.float32)
    all_emb = jnp.concatenate([user_emb, item_emb], axis=0)

    users = jax.random.randint(k_uid, (BATCH,), 0, NUM_USERS)
    items = jax.random.randint(k_iid, (BATCH,), 0, NUM_ITEMS)

    scores, _, _ = lightgcn_forward(graph, all_emb, users, items)
    scores = jax.block_until_ready(scores)

    ref = reference_forward(graph, all_emb, users, items)
    # bf16 MXU propagation + approx reciprocal -> relaxed tolerance
    if not bool(jnp.allclose(scores, ref, atol=1e-2, rtol=1e-2)):
        raise AssertionError(f"mismatch: pallas={scores} ref={ref}")

    print("KERNEL_OK")
</pallas_src>

<mosaic_0001>
module attributes {stable_mosaic.version = 11 : i64} {
  func.func @lightgcn_fused_kernel(%arg0: i32, %arg1: memref<8xi32, #tpu.memory_space<smem>>, %arg2: memref<8xi32, #tpu.memory_space<smem>>, %arg3: memref<128x128xf32, #tpu.memory_space<vmem>>, %arg4: memref<128x128xf32, #tpu.memory_space<vmem>>, %arg5: memref<128x128xf32, #tpu.memory_space<vmem>>, %arg6: memref<1x8xf32, #tpu.memory_space<vmem>>) attributes {dimension_semantics = [#tpu.dimension_semantics<arbitrary>], iteration_bounds = array<i64: 1>, scalar_prefetch = 2 : i64, scratch_operands = 0 : i64, tpu.core_type = #tpu.core_type<tc>, window_params = [{pipeline_mode = #tpu.pipeline_mode<synchronous>, transform_indices = @transform_0, window_bounds = array<i64: 128, 128>}, {pipeline_mode = #tpu.pipeline_mode<synchronous>, transform_indices = @transform_1, window_bounds = array<i64: 128, 128>}, {pipeline_mode = #tpu.pipeline_mode<synchronous>, transform_indices = @transform_2, window_bounds = array<i64: 128, 128>}, {pipeline_mode = #tpu.pipeline_mode<synchronous>, transform_indices = @transform_3, window_bounds = array<i64: 1, 8>}]} {
    %c0 = arith.constant 0 : index
    %c0_0 = arith.constant 0 : index
    %0 = vector.load %arg3[%c0, %c0_0] : memref<128x128xf32, #tpu.memory_space<vmem>>, vector<128x128xf32>
    %1 = arith.truncf %0 : vector<128x128xf32> to vector<128x128xbf16>
    %c0_1 = arith.constant 0 : index
    %c0_2 = arith.constant 0 : index
    %2 = vector.load %arg4[%c0_1, %c0_2] : memref<128x128xf32, #tpu.memory_space<vmem>>, vector<128x128xf32>
    %3 = arith.truncf %2 : vector<128x128xf32> to vector<128x128xbf16>
    %cst = arith.constant dense<0.000000e+00> : vector<128x128xf32>
    %4 = tpu.matmul %1, %3, %cst {dimension_numbers = #tpu.dot_dimension_numbers<[1], [0], [0], [1], [0, 0, 1, 1], [], []>} : vector<128x128xbf16>, vector<128x128xbf16>, vector<128x128xf32> -> vector<128x128xf32>
    %5 = arith.addf %2, %4 : vector<128x128xf32>
    %6 = arith.truncf %4 : vector<128x128xf32> to vector<128x128xbf16>
    %cst_3 = arith.constant dense<0.000000e+00> : vector<128x128xf32>
    %7 = tpu.matmul %1, %6, %cst_3 {dimension_numbers = #tpu.dot_dimension_numbers<[1], [0], [0], [1], [0, 0, 1, 1], [], []>} : vector<128x128xbf16>, vector<128x128xbf16>, vector<128x128xf32> -> vector<128x128xf32>
    %8 = arith.addf %5, %7 : vector<128x128xf32>
    %9 = arith.truncf %7 : vector<128x128xf32> to vector<128x128xbf16>
    %cst_4 = arith.constant dense<0.000000e+00> : vector<128x128xf32>
    %10 = tpu.matmul %1, %9, %cst_4 {dimension_numbers = #tpu.dot_dimension_numbers<[1], [0], [0], [1], [0, 0, 1, 1], [], []>} : vector<128x128xbf16>, vector<128x128xbf16>, vector<128x128xf32> -> vector<128x128xf32>
    %11 = arith.addf %8, %10 : vector<128x128xf32>
    %cst_5 = arith.constant 2.500000e-01 : f32
    %12 = vector.broadcast %cst_5 : f32 to vector<128x128xf32>
    %13 = arith.mulf %11, %12 : vector<128x128xf32>
    %c0_6 = arith.constant 0 : index
    %c0_7 = arith.constant 0 : index
    %14 = vector.load %arg5[%c0_6, %c0_7] : memref<128x128xf32, #tpu.memory_space<vmem>>, vector<128x128xf32>
    tpu.vector_store %arg5[%c0_6, %c0_7], %13 {strides = array<i32>} : memref<128x128xf32, #tpu.memory_space<vmem>>, vector<128x128xf32>,
    %15 = tpu.iota {dimensions = array<i32: 1>} : vector<1x8xi32>
    %cst_8 = arith.constant 0.000000e+00 : f32
    %16 = vector.broadcast %cst_8 : f32 to vector<1x8xf32>
    %c0_9 = arith.constant 0 : index
    %17 = memref.load %arg1[%c0_9] : memref<8xi32, #tpu.memory_space<smem>>
    %c0_10 = arith.constant 0 : index
    %18 = memref.load %arg2[%c0_10] : memref<8xi32, #tpu.memory_space<smem>>
    %19 = arith.index_cast %17 : i32 to index
    %c0_11 = arith.constant 0 : index
    %20 = vector.load %arg5[%19, %c0_11] : memref<128x128xf32, #tpu.memory_space<vmem>>, vector<1x128xf32>
    %c48_i32 = arith.constant 48 : i32
    %21 = arith.addi %c48_i32, %18 : i32
    %22 = arith.index_cast %21 : i32 to index
    %c0_12 = arith.constant 0 : index
    %23 = vector.load %arg5[%22, %c0_12] : memref<128x128xf32, #tpu.memory_space<vmem>>, vector<1x128xf32>
    %24 = arith.mulf %20, %23 : vector<1x128xf32>
    %cst_13 = arith.constant dense<0.000000e+00> : vector<1xf32>
    %25 = vector.multi_reduction <add>, %24, %cst_13 [1] : vector<1x128xf32> to vector<1xf32>
    %26 = vector.shape_cast %25 : vector<1xf32> to vector<1x1xf32>
    %c0_i32 = arith.constant 0 : i32
    %27 = vector.broadcast %c0_i32 : i32 to vector<1x8xi32>
    %28 = arith.cmpi eq, %15, %27 : vector<1x8xi32>
    %29 = vector.shape_cast %26 : vector<1x1xf32> to vector<1x1xf32>
    %30 = vector.broadcast %29 : vector<1x1xf32> to vector<1x8xf32>
    %31 = arith.select %28, %30, %16 : vector<1x8xi1>, vector<1x8xf32>
    %c1 = arith.constant 1 : index
    %32 = memref.load %arg1[%c1] : memref<8xi32, #tpu.memory_space<smem>>
    %c1_14 = arith.constant 1 : index
    %33 = memref.load %arg2[%c1_14] : memref<8xi32, #tpu.memory_space<smem>>
    %34 = arith.index_cast %32 : i32 to index
    %c0_15 = arith.constant 0 : index
    %35 = vector.load %arg5[%34, %c0_15] : memref<128x128xf32, #tpu.memory_space<vmem>>, vector<1x128xf32>
    %c48_i32_16 = arith.constant 48 : i32
    %36 = arith.addi %c48_i32_16, %33 : i32
    %37 = arith.index_cast %36 : i32 to index
    %c0_17 = arith.constant 0 : index
    %38 = vector.load %arg5[%37, %c0_17] : memref<128x128xf32, #tpu.memory_space<vmem>>, vector<1x128xf32>
    %39 = arith.mulf %35, %38 : vector<1x128xf32>
    %cst_18 = arith.constant dense<0.000000e+00> : vector<1xf32>
    %40 = vector.multi_reduction <add>, %39, %cst_18 [1] : vector<1x128xf32> to vector<1xf32>
    %41 = vector.shape_cast %40 : vector<1xf32> to vector<1x1xf32>
    %c1_i32 = arith.constant 1 : i32
    %42 = vector.broadcast %c1_i32 : i32 to vector<1x8xi32>
    %43 = arith.cmpi eq, %15, %42 : vector<1x8xi32>
    %44 = vector.shape_cast %41 : vector<1x1xf32> to vector<1x1xf32>
    %45 = vector.broadcast %44 : vector<1x1xf32> to vector<1x8xf32>
    %46 = arith.select %43, %45, %31 : vector<1x8xi1>, vector<1x8xf32>
    %c2 = arith.constant 2 : index
    %47 = memref.load %arg1[%c2] : memref<8xi32, #tpu.memory_space<smem>>
    %c2_19 = arith.constant 2 : index
    %48 = memref.load %arg2[%c2_19] : memref<8xi32, #tpu.memory_space<smem>>
    %49 = arith.index_cast %47 : i32 to index
    %c0_20 = arith.constant 0 : index
    %50 = vector.load %arg5[%49, %c0_20] : memref<128x128xf32, #tpu.memory_space<vmem>>, vector<1x128xf32>
    %c48_i32_21 = arith.constant 48 : i32
    %51 = arith.addi %c48_i32_21, %48 : i32
    %52 = arith.index_cast %51 : i32 to index
    %c0_22 = arith.constant 0 : index
    %53 = vector.load %arg5[%52, %c0_22] : memref<128x128xf32, #tpu.memory_space<vmem>>, vector<1x128xf32>
    %54 = arith.mulf %50, %53 : vector<1x128xf32>
    %cst_23 = arith.constant dense<0.000000e+00> : vector<1xf32>
    %55 = vector.multi_reduction <add>, %54, %cst_23 [1] : vector<1x128xf32> to vector<1xf32>
    %56 = vector.shape_cast %55 : vector<1xf32> to vector<1x1xf32>
    %c2_i32 = arith.constant 2 : i32
    %57 = vector.broadcast %c2_i32 : i32 to vector<1x8xi32>
    %58 = arith.cmpi eq, %15, %57 : vector<1x8xi32>
    %59 = vector.shape_cast %56 : vector<1x1xf32> to vector<1x1xf32>
    %60 = vector.broadcast %59 : vector<1x1xf32> to vector<1x8xf32>
    %61 = arith.select %58, %60, %46 : vector<1x8xi1>, vector<1x8xf32>
    %c3 = arith.constant 3 : index
    %62 = memref.load %arg1[%c3] : memref<8xi32, #tpu.memory_space<smem>>
    %c3_24 = arith.constant 3 : index
    %63 = memref.load %arg2[%c3_24] : memref<8xi32, #tpu.memory_space<smem>>
    %64 = arith.index_cast %62 : i32 to index
    %c0_25 = arith.constant 0 : index
    %65 = vector.load %arg5[%64, %c0_25] : memref<128x128xf32, #tpu.memory_space<vmem>>, vector<1x128xf32>
    %c48_i32_26 = arith.constant 48 : i32
    %66 = arith.addi %c48_i32_26, %63 : i32
    %67 = arith.index_cast %66 : i32 to index
    %c0_27 = arith.constant 0 : index
    %68 = vector.load %arg5[%67, %c0_27] : memref<128x128xf32, #tpu.memory_space<vmem>>, vector<1x128xf32>
    %69 = arith.mulf %65, %68 : vector<1x128xf32>
    %cst_28 = arith.constant dense<0.000000e+00> : vector<1xf32>
    %70 = vector.multi_reduction <add>, %69, %cst_28 [1] : vector<1x128xf32> to vector<1xf32>
    %71 = vector.shape_cast %70 : vector<1xf32> to vector<1x1xf32>
    %c3_i32 = arith.constant 3 : i32
    %72 = vector.broadcast %c3_i32 : i32 to vector<1x8xi32>
    %73 = arith.cmpi eq, %15, %72 : vector<1x8xi32>
    %74 = vector.shape_cast %71 : vector<1x1xf32> to vector<1x1xf32>
    %75 = vector.broadcast %74 : vector<1x1xf32> to vector<1x8xf32>
    %76 = arith.select %73, %75, %61 : vector<1x8xi1>, vector<1x8xf32>
    %c4 = arith.constant 4 : index
    %77 = memref.load %arg1[%c4] : memref<8xi32, #tpu.memory_space<smem>>
    %c4_29 = arith.constant 4 : index
    %78 = memref.load %arg2[%c4_29] : memref<8xi32, #tpu.memory_space<smem>>
    %79 = arith.index_cast %77 : i32 to index
    %c0_30 = arith.constant 0 : index
    %80 = vector.load %arg5[%79, %c0_30] : memref<128x128xf32, #tpu.memory_space<vmem>>, vector<1x128xf32>
    %c48_i32_31 = arith.constant 48 : i32
    %81 = arith.addi %c48_i32_31, %78 : i32
    %82 = arith.index_cast %81 : i32 to index
    %c0_32 = arith.constant 0 : index
    %83 = vector.load %arg5[%82, %c0_32] : memref<128x128xf32, #tpu.memory_space<vmem>>, vector<1x128xf32>
    %84 = arith.mulf %80, %83 : vector<1x128xf32>
    %cst_33 = arith.constant dense<0.000000e+00> : vector<1xf32>
    %85 = vector.multi_reduction <add>, %84, %cst_33 [1] : vector<1x128xf32> to vector<1xf32>
    %86 = vector.shape_cast %85 : vector<1xf32> to vector<1x1xf32>
    %c4_i32 = arith.constant 4 : i32
    %87 = vector.broadcast %c4_i32 : i32 to vector<1x8xi32>
    %88 = arith.cmpi eq, %15, %87 : vector<1x8xi32>
    %89 = vector.shape_cast %86 : vector<1x1xf32> to vector<1x1xf32>
    %90 = vector.broadcast %89 : vector<1x1xf32> to vector<1x8xf32>
    %91 = arith.select %88, %90, %76 : vector<1x8xi1>, vector<1x8xf32>
    %c5 = arith.constant 5 : index
    %92 = memref.load %arg1[%c5] : memref<8xi32, #tpu.memory_space<smem>>
    %c5_34 = arith.constant 5 : index
    %93 = memref.load %arg2[%c5_34] : memref<8xi32, #tpu.memory_space<smem>>
    %94 = arith.index_cast %92 : i32 to index
    %c0_35 = arith.constant 0 : index
    %95 = vector.load %arg5[%94, %c0_35] : memref<128x128xf32, #tpu.memory_space<vmem>>, vector<1x128xf32>
    %c48_i32_36 = arith.constant 48 : i32
    %96 = arith.addi %c48_i32_36, %93 : i32
    %97 = arith.index_cast %96 : i32 to index
    %c0_37 = arith.constant 0 : index
    %98 = vector.load %arg5[%97, %c0_37] : memref<128x128xf32, #tpu.memory_space<vmem>>, vector<1x128xf32>
    %99 = arith.mulf %95, %98 : vector<1x128xf32>
    %cst_38 = arith.constant dense<0.000000e+00> : vector<1xf32>
    %100 = vector.multi_reduction <add>, %99, %cst_38 [1] : vector<1x128xf32> to vector<1xf32>
    %101 = vector.shape_cast %100 : vector<1xf32> to vector<1x1xf32>
    %c5_i32 = arith.constant 5 : i32
    %102 = vector.broadcast %c5_i32 : i32 to vector<1x8xi32>
    %103 = arith.cmpi eq, %15, %102 : vector<1x8xi32>
    %104 = vector.shape_cast %101 : vector<1x1xf32> to vector<1x1xf32>
    %105 = vector.broadcast %104 : vector<1x1xf32> to vector<1x8xf32>
    %106 = arith.select %103, %105, %91 : vector<1x8xi1>, vector<1x8xf32>
    %c6 = arith.constant 6 : index
    %107 = memref.load %arg1[%c6] : memref<8xi32, #tpu.memory_space<smem>>
    %c6_39 = arith.constant 6 : index
    %108 = memref.load %arg2[%c6_39] : memref<8xi32, #tpu.memory_space<smem>>
    %109 = arith.index_cast %107 : i32 to index
    %c0_40 = arith.constant 0 : index
    %110 = vector.load %arg5[%109, %c0_40] : memref<128x128xf32, #tpu.memory_space<vmem>>, vector<1x128xf32>
    %c48_i32_41 = arith.constant 48 : i32
    %111 = arith.addi %c48_i32_41, %108 : i32
    %112 = arith.index_cast %111 : i32 to index
    %c0_42 = arith.constant 0 : index
    %113 = vector.load %arg5[%112, %c0_42] : memref<128x128xf32, #tpu.memory_space<vmem>>, vector<1x128xf32>
    %114 = arith.mulf %110, %113 : vector<1x128xf32>
    %cst_43 = arith.constant dense<0.000000e+00> : vector<1xf32>
    %115 = vector.multi_reduction <add>, %114, %cst_43 [1] : vector<1x128xf32> to vector<1xf32>
    %116 = vector.shape_cast %115 : vector<1xf32> to vector<1x1xf32>
    %c6_i32 = arith.constant 6 : i32
    %117 = vector.broadcast %c6_i32 : i32 to vector<1x8xi32>
    %118 = arith.cmpi eq, %15, %117 : vector<1x8xi32>
    %119 = vector.shape_cast %116 : vector<1x1xf32> to vector<1x1xf32>
    %120 = vector.broadcast %119 : vector<1x1xf32> to vector<1x8xf32>
    %121 = arith.select %118, %120, %106 : vector<1x8xi1>, vector<1x8xf32>
    %c7 = arith.constant 7 : index
    %122 = memref.load %arg1[%c7] : memref<8xi32, #tpu.memory_space<smem>>
    %c7_44 = arith.constant 7 : index
    %123 = memref.load %arg2[%c7_44] : memref<8xi32, #tpu.memory_space<smem>>
    %124 = arith.index_cast %122 : i32 to index
    %c0_45 = arith.constant 0 : index
    %125 = vector.load %arg5[%124, %c0_45] : memref<128x128xf32, #tpu.memory_space<vmem>>, vector<1x128xf32>
    %c48_i32_46 = arith.constant 48 : i32
    %126 = arith.addi %c48_i32_46, %123 : i32
    %127 = arith.index_cast %126 : i32 to index
    %c0_47 = arith.constant 0 : index
    %128 = vector.load %arg5[%127, %c0_47] : memref<128x128xf32, #tpu.memory_space<vmem>>, vector<1x128xf32>
    %129 = arith.mulf %125, %128 : vector<1x128xf32>
    %cst_48 = arith.constant dense<0.000000e+00> : vector<1xf32>
    %130 = vector.multi_reduction <add>, %129, %cst_48 [1] : vector<1x128xf32> to vector<1xf32>
    %131 = vector.shape_cast %130 : vector<1xf32> to vector<1x1xf32>
    %c7_i32 = arith.constant 7 : i32
    %132 = vector.broadcast %c7_i32 : i32 to vector<1x8xi32>
    %133 = arith.cmpi eq, %15, %132 : vector<1x8xi32>
    %134 = vector.shape_cast %131 : vector<1x1xf32> to vector<1x1xf32>
    %135 = vector.broadcast %134 : vector<1x1xf32> to vector<1x8xf32>
    %136 = arith.select %133, %135, %121 : vector<1x8xi1>, vector<1x8xf32>
    %cst_49 = arith.constant 0.000000e+00 : f32
    %137 = vector.broadcast %cst_49 : f32 to vector<1x8xf32>
    %138 = arith.subf %137, %136 : vector<1x8xf32>
    %139 = math.exp %138 : vector<1x8xf32>
    %cst_50 = arith.constant 1.000000e+00 : f32
    %140 = vector.broadcast %cst_50 : f32 to vector<1x8xf32>
    %141 = arith.addf %140, %139 : vector<1x8xf32>
    %142 = tpu.reciprocal %141 {approx = true} : vector<1x8xf32> -> vector<1x8xf32>
    %c0_51 = arith.constant 0 : index
    %c0_52 = arith.constant 0 : index
    %143 = vector.load %arg6[%c0_51, %c0_52] : memref<1x8xf32, #tpu.memory_space<vmem>>, vector<1x8xf32>
    tpu.vector_store %arg6[%c0_51, %c0_52], %142 {strides = array<i32>} : memref<1x8xf32, #tpu.memory_space<vmem>>, vector<1x8xf32>,
    return
  }
  func.func @transform_0(%arg0: i32, %arg1: memref<8xi32, #tpu.memory_space<smem>>, %arg2: memref<8xi32, #tpu.memory_space<smem>>) -> (i32, i32) {
    %c0_i32 = arith.constant 0 : i32
    %c0_i32_0 = arith.constant 0 : i32
    %c0_i32_1 = arith.constant 0 : i32
    return %c0_i32, %c0_i32_0 : i32, i32
  }
  func.func @transform_1(%arg0: i32, %arg1: memref<8xi32, #tpu.memory_space<smem>>, %arg2: memref<8xi32, #tpu.memory_space<smem>>) -> (i32, i32) {
    %c0_i32 = arith.constant 0 : i32
    %c0_i32_0 = arith.constant 0 : i32
    %c0_i32_1 = arith.constant 0 : i32
    return %c0_i32, %c0_i32_0 : i32, i32
  }
  func.func @transform_2(%arg0: i32, %arg1: memref<8xi32, #tpu.memory_space<smem>>, %arg2: memref<8xi32, #tpu.memory_space<smem>>) -> (i32, i32) {
    %c0_i32 = arith.constant 0 : i32
    %c0_i32_0 = arith.constant 0 : i32
    %c0_i32_1 = arith.constant 0 : i32
    return %c0_i32, %c0_i32_0 : i32, i32
  }
  func.func @transform_3(%arg0: i32, %arg1: memref<8xi32, #tpu.memory_space<smem>>, %arg2: memref<8xi32, #tpu.memory_space<smem>>) -> (i32, i32) {
    %c0_i32 = arith.constant 0 : i32
    %c0_i32_0 = arith.constant 0 : i32
    %c0_i32_1 = arith.constant 0 : i32
    return %c0_i32, %c0_i32_0 : i32, i32
  }
}

</mosaic_0001>

<bundles_post_ra>
// kernel: tpu_custom_call.1
= control target key start
LH: loop header
LB: loop body
LE: loop exit
PB: predicated region body
PF: predicated region fallthrough
CT: control target
= control target key end

     0   :  { %s963_s18 = smov [#allocation3]   ;;  %s1275_s0 = inlined_call_operand.hbm [shape: s32[8], index: 0, kind: input, shape index: {}]   ;;  %s1276_s2 = inlined_call_operand.hbm [shape: f32[128,128], index: 2, kind: input, shape index: {}]   ;;  %s1277_s3 = inlined_call_operand.hbm [shape: f32[128,128], index: 3, kind: input, shape index: {}]   ;;  %s1278_s4 = inlined_call_operand.hbm [shape: f32[128,128], index: 4, kind: output, shape index: {0}]   ;;  %s1279_s5 = inlined_call_operand.hbm [shape: f32[1,8], index: 5, kind: output, shape index: {1}]   ;;  %s1280_s1 = inlined_call_operand.vmem [shape: s32[8], index: 1, kind: input, shape index: {}]  }
   0x1   :  { %12 = dma.hbm_to_smem %s1275_s0, 16, %s963_s18, [#allocation2] }
   0x2   :  { %s13_s23 = sshll.u32 %s1280_s1, 4  ;;  %s14_s23 = int_to_ptr.vmem [resolvable:$true] %s13_s23 }
   0x3   :  { %s861_s24 = scalar_lea.vmem %s14_s23, 16  ;;  %p866_p1 = scmp.lt.s32.totalorder %s14_s23, %s14_s23 }
   0x4   :  { %p862_p0 = scmp.ne.s32.totalorder %s14_s23, %s861_s24  ;;  %p867_p2 = scmp.lt.s32.totalorder %s861_s24, %s861_s24 }
   0x6   :  { %p868_p3 = por %p867_p2, %p866_p1 }
   0x8   :  { %p869_p4 = pnand %p868_p3, %p862_p0 }
   0xa   :  { %872 = shalt.err (!%p869_p4)  }
   0xb   :  { %s964_s25 = smov [#allocation4]  }
   0xc   :  { %16 = dma.vmem_to_smem %s14_s23, 16, %s964_s25, [#allocation2] }
   0xd   :  { %953 = dma.done.wait [#allocation2], 32 }
   0xe   :  { %954 = vsyncadd [#allocation2], 4294967264 }
   0xf   :  { %18 = sfence }
  0x10   :  { %19 = vsyncpa [#allocation6], 0 }
  0x11   :  { %20 = vsyncpa [#allocation9], 0 }
  0x12   :  { %21 = vsyncpa [#allocation7], 0 }
  0x13   :  { %22 = vsyncpa [#allocation12], 0  ;;  %s965_s0 = smov [#allocation5]  }
  0x14   :  { %s28_s26 = sshll.u32 %s965_s0, 4  ;;  %s29_s26 = int_to_ptr.vmem [resolvable:$true] %s28_s26 }
  0x15   :  { %s881_s1 = scalar_lea.vmem %s29_s26, 2048  ;;  %p886_p6 = scmp.lt.s32.totalorder %s29_s26, %s29_s26 }
  0x16   :  { %p882_p5 = scmp.ne.s32.totalorder %s29_s26, %s881_s1  ;;  %p887_p7 = scmp.lt.s32.totalorder %s881_s1, %s881_s1 }
  0x18   :  { %p888_p8 = por %p887_p7, %p886_p6 }
  0x1a   :  { %p889_p9 = pnand %p888_p8, %p882_p5 }
  0x1c   :  { %892 = shalt.err (!%p889_p9)
}
  0x1d   :  { %s966_s27 = smov 128   ;;  %s967_s28 = smov 8  }
  0x1e   :  { %34 = dma.hbm_to_vmem [thread:$0]  %s1276_s2, 2048, %s29_s26, [#allocation6], %s966_s27, %s966_s27, %s967_s28  }
  0x1f   :  { %s968_s6 = smov [#allocation8]  }
  0x20   :  { %s40_s7 = sshll.u32 %s968_s6, 4  ;;  %s41_s7 = int_to_ptr.vmem [resolvable:$true] %s40_s7 }
  0x21   :  { %s901_s8 = scalar_lea.vmem %s41_s7, 2048  ;;  %p906_p11 = scmp.lt.s32.totalorder %s41_s7, %s41_s7 }
  0x22   :  { %p902_p10 = scmp.ne.s32.totalorder %s41_s7, %s901_s8  ;;  %p907_p12 = scmp.lt.s32.totalorder %s901_s8, %s901_s8 }
  0x24   :  { %p908_p13 = por %p907_p12, %p906_p11 }
  0x26   :  { %p909_p0 = pnand %p908_p13, %p902_p10 }
  0x28   :  { %912 = shalt.err (!%p909_p0)
}
  0x29   :  { %46 = dma.hbm_to_vmem [thread:$0]  %s1277_s3, 2048, %s41_s7, [#allocation9], %s966_s27, %s966_s27, %s967_s28  }
  0x2a   :  { %955 = dma.done.wait [#allocation6], 2048  }
  0x2b   :  { %956 = vsyncadd [#allocation6], 4294965248 }
  0x2c   :  { %957 = dma.done.wait [#allocation9], 2048  }
  0x2d   :  { %958 = vsyncadd [#allocation9], 4294965248  ;;  %v1019_v0 = vld [vmem:[#allocation8 + $0x70] sm:$0xff]  ;;  %v1021_v1 = vld [vmem:[#allocation8 + $0x78] sm:$0xff]  ;;  %s1200_s2 = sld [smem:[#allocation3 + $0x2]]  ;;  %vm499_vm0 = vcmask 1040384  }
  0x2e   :  { %v1023_v2 = vld [vmem:[#allocation8 + $0x60] sm:$0xff]  ;;  %v101_v3 = vpack.c.bf16 %v1021_v1, %v1019_v0  ;;  %v1027_v4 = vld [vmem:[#allocation8 + $0x68] sm:$0xff]  ;;  %v1031_v6 = vld [vmem:[#allocation8 + $0x50] sm:$0xff]  ;;  %s1204_s3 = sld [smem:[#allocation4 + $0x2]] }
  0x2f   :  { %v100_v5 = vpack.c.bf16 %v1027_v4, %v1023_v2  ;;  %v1033_v7 = vld [vmem:[#allocation8 + $0x58] sm:$0xff]  ;;  %v54_v9 = vld [vmem:[#allocation5] sm:$0xff]  ;;  %v55_v10 = vld [vmem:[#allocation5 + $0x8] sm:$0xff]  ;;  %s1208_s11 = sld [smem:[#allocation3]] }
  0x30   :  { %729 = vmatprep.subr.bf16.mxu0 %v101_v3  ;;  %v99_v8 = vpack.c.bf16 %v1033_v7, %v1031_v6  ;;  %v1037_v11 = vld [vmem:[#allocation8 + $0x40] sm:$0xff]  ;;  %v1039_v12 = vld [vmem:[#allocation8 + $0x48] sm:$0xff]  ;;  %v70_v13 = vpack.c.bf16 %v55_v10, %v54_v9  ;;  %v1043_v15 = vld [vmem:[#allocation8 + $0x30] sm:$0xff]  ;;  %s1212_s12 = sld [smem:[#allocation4]] }
  0x31   :  { %730 = vmatpush3.bf16.msra.mxu0 %v101_v3  ;;  %v98_v14 = vpack.c.bf16 %v1039_v12, %v1037_v11  ;;  %v1045_v16 = vld [vmem:[#allocation8 + $0x38] sm:$0xff]  ;;  %v1049_v18 = vld [vmem:[#allocation8 + $0x20] sm:$0xff]  ;;  %v1051_v19 = vld [vmem:[#allocation8 + $0x28] sm:$0xff]  ;;  %s1215_s13 = sld [smem:[#allocation3 + $0x3]] }
  0x32   :  { %731 = vmatprep.subr.bf16.mxu0 %v100_v5  ;;  %745 = vmatprep.mubr.bf16.mxu0 %v70_v13  ;;  %v97_v17 = vpack.c.bf16 %v1045_v16, %v1043_v15  ;;  %v96_v20 = vpack.c.bf16 %v1051_v19, %v1049_v18  ;;  %v1055_v21 = vld [vmem:[#allocation8 + $0x10] sm:$0xff]  ;;  %v1057_v22 = vld [vmem:[#allocation8 + $0x18] sm:$0xff]  ;;  %v1061_v24 = vld [vmem:[#allocation8] sm:$0xff]  ;;  %s1219_s14 = sld [smem:[#allocation4 + $0x3]] }
  0x33   :  { %777 = vmatprep.mubr.bf16.mxu1 %v70_v13  ;;  %v95_v23 = vpack.c.bf16 %v1057_v22, %v1055_v21  ;;  %v1063_v25 = vld [vmem:[#allocation8 + $0x8] sm:$0xff]  ;;  %v56_v27 = vld [vmem:[#allocation5 + $0x10] sm:$0xff]  ;;  %v57_v28 = vld [vmem:[#allocation5 + $0x18] sm:$0xff]  ;;  %s1221_s15 = sld [smem:[#allocation3 + $0x1]]  ;;  %s520_s25 = scalar_lea.vmem [#allocation10], %s1200_s2 }
  0x34   :  { %v94_v26 = vpack.c.bf16 %v1063_v25, %v1061_v24  ;;  %v58_v29 = vld [vmem:[#allocation5 + $0x20] sm:$0xff]  ;;  %v59_v30 = vld [vmem:[#allocation5 + $0x28] sm:$0xff]  ;;  %v1067_v31 = vpack.c.bf16 %v57_v28, %v56_v27  ;;  %v60_v33 = vld [vmem:[#allocation5 + $0x30] sm:$0xff]  ;;  %s1224_s16 = sld [smem:[#allocation4 + $0x1]]  ;;  %s642_s0 = scalar_lea.vmem [#allocation10], %s1204_s3 }
  0x35   :  { %732 = vmatpush3.bf16.msra.mxu0 %v100_v5  ;;  %v1069_v32 = vpack.c.bf16 %v59_v30, %v58_v29  ;;  %v61_v34 = vld [vmem:[#allocation5 + $0x38] sm:$0xff]  ;;  %v62_v35 = vld [vmem:[#allocation5 + $0x40] sm:$0xff]  ;;  %v63_v36 = vld [vmem:[#allocation5 + $0x48] sm:$0xff]  ;;  %s1226_s17 = sld [smem:[#allocation3 + $0x5]]  ;;  %s493_s26 = scalar_lea.vmem [#allocation10], %s1208_s11 }
  0x36   :  { %733 = vmatprep.subr.bf16.mxu0 %v99_v8  ;;  %v1073_v37 = vpack.c.bf16 %v61_v34, %v60_v33  ;;  %v74_v38 = vpack.c.bf16 %v63_v36, %v62_v35  ;;  %v64_v39 = vld [vmem:[#allocation5 + $0x50] sm:$0xff]  ;;  %v65_v40 = vld [vmem:[#allocation5 + $0x58] sm:$0xff]  ;;  %v66_v41 = vld [vmem:[#allocation5 + $0x60] sm:$0xff]  ;;  %s1228_s18 = sld [smem:[#allocation4 + $0x5]]  ;;  %s636_s1 = scalar_lea.vmem [#allocation10], %s1212_s12 }
  0x37   :  { %v67_v42 = vld [vmem:[#allocation5 + $0x68] sm:$0xff]  ;;  %v1076_v43 = vpack.c.bf16 %v65_v40, %v64_v39  ;;  %v68_v45 = vld [vmem:[#allocation5 + $0x70] sm:$0xff]  ;;  %v69_v46 = vld [vmem:[#allocation5 + $0x78] sm:$0xff]  ;;  %s1230_s19 = sld [smem:[#allocation3 + $0x4]]  ;;  %s533_s29 = scalar_lea.vmem [#allocation10], %s1215_s13 }
  0x38   :  { %v1078_v44 = vpack.c.bf16 %v67_v42, %v66_v41  ;;  %v1082_v47 = vpack.c.bf16 %v69_v46, %v68_v45  ;;  %s1232_s20 = sld [smem:[#allocation4 + $0x4]]  ;;  %s645_s30 = scalar_lea.vmem [#allocation10], %s1219_s14 }
  0x39   :  { %734 = vmatpush3.bf16.msra.mxu0 %v99_v8  ;;  %s1234_s21 = sld [smem:[#allocation3 + $0x7]]  ;;  %s507_s6 = scalar_lea.vmem [#allocation10], %s1221_s15 }
  0x3a   :  { %735 = vmatprep.subr.bf16.mxu0 %v98_v14  ;;  %s1236_s22 = sld [smem:[#allocation4 + $0x7]]  ;;  %s639_s7 = scalar_lea.vmem [#allocation10], %s1224_s16 }
  0x3b   :  { %s1238_s23 = sld [smem:[#allocation3 + $0x6]]  ;;  %s559_s8 = scalar_lea.vmem [#allocation10], %s1226_s17 }
  0x3c   :  { %s1240_s24 = sld [smem:[#allocation4 + $0x6]]  ;;  %s651_s9 = scalar_lea.vmem [#allocation10], %s1228_s18 }
  0x3d   :  { %736 = vmatpush3.bf16.msra.mxu0 %v98_v14  ;;  %s546_s10 = scalar_lea.vmem [#allocation10], %s1230_s19  ;;  %s969_s14 = smov [#allocation10]  }
  0x3e   :  { %737 = vmatprep.subr.bf16.mxu0 %v97_v17  ;;  %s648_s2 = scalar_lea.vmem [#allocation10], %s1232_s20  ;;  %s608_s15 = sshll.u32 %s969_s14, 4  ;;  %s609_s15 = int_to_ptr.vmem [resolvable:$true] %s608_s15 }
  0x3f   :  { %s585_s3 = scalar_lea.vmem [#allocation10], %s1234_s21  ;;  %s913_s16 = scalar_lea.vmem %s609_s15, 2048 }
  0x40   :  { %s657_s11 = scalar_lea.vmem [#allocation10], %s1236_s22  ;;  %p914_p1 = scmp.ne.s32.totalorder %s609_s15, %s913_s16 }
  0x41   :  { %738 = vmatpush3.bf16.msra.mxu0 %v97_v17  ;;  %s572_s12 = scalar_lea.vmem [#allocation10], %s1238_s23  ;;  %p918_p2 = scmp.lt.s32.totalorder %s609_s15, %s609_s15 }
  0x42   :  { %739 = vmatprep.subr.bf16.mxu0 %v96_v20  ;;  %s654_s13 = scalar_lea.vmem [#allocation10], %s1240_s24  ;;  %p919_p3 = scmp.lt.s32.totalorder %s913_s16, %s913_s16 }
  0x44   :  { %p920_p4 = por %p919_p3, %p918_p2 }
  0x45   :  { %740 = vmatpush3.bf16.msra.mxu0 %v96_v20 }
  0x46   :  { %741 = vmatprep.subr.bf16.mxu0 %v95_v23  ;;  %p921_p5 = pnand %p920_p4, %p914_p1 }
  0x49   :  { %742 = vmatpush3.bf16.msra.mxu0 %v95_v23 }
  0x4a   :  { %743 = vmatprep.subr.bf16.mxu0 %v94_v26 }
  0x4d   :  { %744 = vmatpush3.bf16.msra.mxu0 %v94_v26 }
  0x50   :  { %746 = vmatmul.mubr.bf16.vlgmr.msra.gmra.mxu0 %v1067_v31 }
  0x51   :  { %749 = vmatprep.mubr.bf16.mxu0 %v1069_v32 }
  0x58   :  { %750 = vmatmul.mubr.bf16.gmra.mxu0 %v1073_v37 }
  0x59   :  { %753 = vmatprep.mubr.bf16.mxu0 %v74_v38 }
  0x60   :  { %754 = vmatmul.mubr.bf16.gmra.mxu0 %v1076_v43 }
  0x61   :  { %757 = vmatprep.mubr.bf16.mxu0 %v1078_v44 }
  0x68   :  { %758 = vmatmul.mubr.bf16.gmra.mxu0 %v1082_v47 }
  0x69   :  { %809 = vmatprep.mubr.bf16.mxu0 %v70_v13 }
 0x110   :  { %v747_v48 = vpop.f32.mrf.mxu0 }
 0x111   :  { %v201_v20 = vadd.f32 %v747_v48, %v1055_v21 }
 0x112   :  { %v136_v49 = vpop.f32.mrf.mxu0 }
 0x113   :  { %v199_v26 = vadd.f32 %v136_v49, %v1061_v24 }
 0x114   :  { %v748_v50 = vpop.f32.mrf.mxu0 }
 0x115   :  { %v216_v14 = vpack.c.bf16 %v748_v50, %v747_v48  ;;  %v202_v29 = vadd.f32 %v748_v50, %v1057_v22 }
 0x116   :  { %v139_v51 = vpop.f32.mrf.mxu0 }
 0x117   :  { %v215_v17 = vpack.c.bf16 %v139_v51, %v136_v49  ;;  %v200_v34 = vadd.f32 %v139_v51, %v1063_v25 }
 0x118   :  { %v751_v52 = vpop.f32.mrf.mxu0 }
 0x119   :  { %v205_v24 = vadd.f32 %v751_v52, %v1043_v15 }
 0x11a   :  { %v152_v53 = vpop.f32.mrf.mxu0 }
 0x11b   :  { %v203_v22 = vadd.f32 %v152_v53, %v1049_v18 }
 0x11c   :  { %v752_v54 = vpop.f32.mrf.mxu0 }
 0x11d   :  { %v218_v10 = vpack.c.bf16 %v752_v54, %v751_v52  ;;  %v206_v41 = vadd.f32 %v752_v54, %v1045_v16 }
 0x11e   :  { %v155_v55 = vpop.f32.mrf.mxu0 }
 0x11f   :  { %v217_v13 = vpack.c.bf16 %v155_v55, %v152_v53  ;;  %v204_v45 = vadd.f32 %v155_v55, %v1051_v19 }
 0x120   :  { %v1085_v56 = vpop.f32.mrf.mxu0 }
 0x121   :  { %v209_v15 = vadd.f32 %v1085_v56, %v1031_v6 }
 0x122   :  { %v1087_v57 = vpop.f32.mrf.mxu0 }
 0x123   :  { %v207_v18 = vadd.f32 %v1087_v57, %v1037_v11 }
 0x124   :  { %v1089_v58 = vpop.f32.mrf.mxu0 }
 0x125   :  { %v220_v8 = vpack.c.bf16 %v1089_v58, %v1085_v56  ;;  %v210_v52 = vadd.f32 %v1089_v58, %v1033_v7 }
 0x126   :  { %v1091_v59 = vpop.f32.mrf.mxu0 }
 0x127   :  { %v219_v9 = vpack.c.bf16 %v1091_v59, %v1087_v57  ;;  %v208_v54 = vadd.f32 %v1091_v59, %v1039_v12 }
 0x128   :  { %v1093_v60 = vpop.f32.mrf.mxu0 }
 0x129   :  { %v213_v56 = vadd.f32 %v1093_v60, %v1019_v0 }
 0x12a   :  { %v1095_v61 = vpop.f32.mrf.mxu0 }
 0x12b   :  { %v211_v57 = vadd.f32 %v1095_v61, %v1023_v2 }
 0x12c   :  { %v1097_v62 = vpop.f32.mrf.mxu0 }
 0x12d   :  { %v222_v63 = vpack.c.bf16 %v1097_v62, %v1093_v60  ;;  %v214_v58 = vadd.f32 %v1097_v62, %v1021_v1 }
 0x12e   :  { %v1101_v3 = vpop.f32.mrf.mxu0 }
 0x12f   :  { %v221_v5 = vpack.c.bf16 %v1101_v3, %v1095_v61  ;;  %761 = vmatprep.subr.bf16.mxu1 %v222_v63 }
 0x130   :  { %762 = vmatpush3.bf16.msra.mxu1 %v222_v63 }
 0x131   :  { %763 = vmatprep.subr.bf16.mxu1 %v221_v5 }
 0x134   :  { %764 = vmatpush3.bf16.msra.mxu1 %v221_v5 }
 0x135   :  { %765 = vmatprep.subr.bf16.mxu1 %v220_v8 }
 0x138   :  { %766 = vmatpush3.bf16.msra.mxu1 %v220_v8 }
 0x139   :  { %767 = vmatprep.subr.bf16.mxu1 %v219_v9 }
 0x13c   :  { %768 = vmatpush3.bf16.msra.mxu1 %v219_v9 }
 0x13d   :  { %769 = vmatprep.subr.bf16.mxu1 %v218_v10 }
 0x140   :  { %770 = vmatpush3.bf16.msra.mxu1 %v218_v10 }
 0x141   :  { %771 = vmatprep.subr.bf16.mxu1 %v217_v13 }
 0x144   :  { %772 = vmatpush3.bf16.msra.mxu1 %v217_v13 }
 0x145   :  { %773 = vmatprep.subr.bf16.mxu1 %v216_v14 }
 0x148   :  { %774 = vmatpush3.bf16.msra.mxu1 %v216_v14 }
 0x149   :  { %775 = vmatprep.subr.bf16.mxu1 %v215_v17 }
 0x14c   :  { %776 = vmatpush3.bf16.msra.mxu1 %v215_v17 }
 0x14f   :  { %778 = vmatmul.mubr.bf16.vlgmr.msra.gmra.mxu1 %v1067_v31 }
 0x150   :  { %781 = vmatprep.mubr.bf16.mxu1 %v1069_v32 }
 0x157   :  { %782 = vmatmul.mubr.bf16.gmra.mxu1 %v1073_v37 }
 0x158   :  { %785 = vmatprep.mubr.bf16.mxu1 %v74_v38 }
 0x15f   :  { %786 = vmatmul.mubr.bf16.gmra.mxu1 %v1076_v43 }
 0x160   :  { %789 = vmatprep.mubr.bf16.mxu1 %v1078_v44 }
 0x167   :  { %790 = vmatmul.mubr.bf16.gmra.mxu1 %v1082_v47 }
 0x168   :  { %817 = vmatprep.mubr.bf16.mxu1 %v74_v38 }
 0x20f   :  { %v1116_v23 = vpop.f32.mrf.mxu1 }
 0x210   :  { %v1120_v27 = vadd.f32 %v1116_v23, %v201_v20 }
 0x211   :  { %v1122_v28 = vpop.f32.mrf.mxu1 }
 0x212   :  { %v1126_v30 = vadd.f32 %v1122_v28, %v199_v26 }
 0x213   :  { %v1128_v33 = vpop.f32.mrf.mxu1 }
 0x214   :  { %v1132_v21 = vadd.f32 %v1128_v33, %v202_v29  ;;  %v337_v62 = vpack.c.bf16 %v1128_v33, %v1116_v23 }
 0x215   :  { %v1134_v35 = vpop.f32.mrf.mxu1 }
 0x216   :  { %v1138_v36 = vadd.f32 %v1134_v35, %v200_v34  ;;  %v336_v13 = vpack.c.bf16 %v1134_v35, %v1122_v28 }
 0x217   :  { %v783_v38 = vpop.f32.mrf.mxu1 }
 0x218   :  { %v1141_v39 = vadd.f32 %v783_v38, %v205_v24 }
 0x219   :  { %v273_v40 = vpop.f32.mrf.mxu1 }
 0x21a   :  { %v1144_v42 = vadd.f32 %v273_v40, %v203_v22 }
 0x21b   :  { %v784_v25 = vpop.f32.mrf.mxu1 }
 0x21c   :  { %v1147_v46 = vadd.f32 %v784_v25, %v206_v41  ;;  %v339_v60 = vpack.c.bf16 %v784_v25, %v783_v38 }
 0x21d   :  { %v276_v48 = vpop.f32.mrf.mxu1 }
 0x21e   :  { %v1151_v49 = vadd.f32 %v276_v48, %v204_v45  ;;  %v338_v61 = vpack.c.bf16 %v276_v48, %v273_v40 }
 0x21f   :  { %v787_v50 = vpop.f32.mrf.mxu1 }
 0x220   :  { %v1155_v51 = vadd.f32 %v787_v50, %v209_v15 }
 0x221   :  { %v289_v16 = vpop.f32.mrf.mxu1 }
 0x222   :  { %v1159_v53 = vadd.f32 %v289_v16, %v207_v18 }
 0x223   :  { %v788_v19 = vpop.f32.mrf.mxu1 }
 0x224   :  { %v1163_v55 = vadd.f32 %v788_v19, %v210_v52  ;;  %v341_v2 = vpack.c.bf16 %v788_v19, %v787_v50  ;;  %v212_v50 = vadd.f32 %v1101_v3, %v1027_v4 }
 0x225   :  { %v292_v6 = vpop.f32.mrf.mxu1 }
 0x226   :  { %v1167_v63 = vadd.f32 %v292_v6, %v208_v54  ;;  %v340_v1 = vpack.c.bf16 %v292_v6, %v289_v16 }
 0x227   :  { %v791_v11 = vpop.f32.mrf.mxu1 }
 0x228   :  { %v1171_v5 = vadd.f32 %v791_v11, %v213_v56 }
 0x229   :  { %v305_v7 = vpop.f32.mrf.mxu1 }
 0x22a   :  { %v1175_v8 = vadd.f32 %v305_v7, %v211_v57 }
 0x22b   :  { %v792_v12 = vpop.f32.mrf.mxu1 }
 0x22c   :  { %v1177_v59 = vadd.f32 %v792_v12, %v214_v58  ;;  %v343_v9 = vpack.c.bf16 %v792_v12, %v791_v11 }
 0x22d   :  { %v1179_v10 = vpop.f32.mrf.mxu1 }
 0x22e   :  { %v342_v0 = vpack.c.bf16 %v1179_v10, %v305_v7  ;;  %793 = vmatprep.subr.bf16.mxu0 %v343_v9  ;;  %825 = vmatprep.subr.bf16.mxu1 %v343_v9 }
 0x22f   :  { %794 = vmatpush3.bf16.msra.mxu0 %v343_v9  ;;  %833 = vmatpush3.bf16.msra.mxu1 %v343_v9 }
 0x230   :  { %795 = vmatprep.subr.bf16.mxu0 %v342_v0  ;;  %826 = vmatprep.subr.bf16.mxu1 %v342_v0 }
 0x233   :  { %796 = vmatpush3.bf16.msra.mxu0 %v342_v0  ;;  %834 = vmatpush3.bf16.msra.mxu1 %v342_v0 }
 0x234   :  { %797 = vmatprep.subr.bf16.mxu0 %v341_v2  ;;  %827 = vmatprep.subr.bf16.mxu1 %v341_v2 }
 0x237   :  { %798 = vmatpush3.bf16.msra.mxu0 %v341_v2  ;;  %835 = vmatpush3.bf16.msra.mxu1 %v341_v2 }
 0x238   :  { %799 = vmatprep.subr.bf16.mxu0 %v340_v1  ;;  %828 = vmatprep.subr.bf16.mxu1 %v340_v1 }
 0x23b   :  { %800 = vmatpush3.bf16.msra.mxu0 %v340_v1  ;;  %836 = vmatpush3.bf16.msra.mxu1 %v340_v1 }
 0x23c   :  { %801 = vmatprep.subr.bf16.mxu0 %v339_v60  ;;  %829 = vmatprep.subr.bf16.mxu1 %v339_v60 }
 0x23f   :  { %802 = vmatpush3.bf16.msra.mxu0 %v339_v60  ;;  %837 = vmatpush3.bf16.msra.mxu1 %v339_v60 }
 0x240   :  { %803 = vmatprep.subr.bf16.mxu0 %v338_v61  ;;  %830 = vmatprep.subr.bf16.mxu1 %v338_v61 }
 0x243   :  { %804 = vmatpush3.bf16.msra.mxu0 %v338_v61  ;;  %838 = vmatpush3.bf16.msra.mxu1 %v338_v61 }
 0x244   :  { %805 = vmatprep.subr.bf16.mxu0 %v337_v62  ;;  %831 = vmatprep.subr.bf16.mxu1 %v337_v62 }
 0x247   :  { %806 = vmatpush3.bf16.msra.mxu0 %v337_v62  ;;  %839 = vmatpush3.bf16.msra.mxu1 %v337_v62 }
 0x248   :  { %807 = vmatprep.subr.bf16.mxu0 %v336_v13  ;;  %832 = vmatprep.subr.bf16.mxu1 %v336_v13 }
 0x24b   :  { %808 = vmatpush3.bf16.msra.mxu0 %v336_v13  ;;  %840 = vmatpush3.bf16.msra.mxu1 %v336_v13 }
 0x24e   :  { %810 = vmatmul.mubr.bf16.vlgmr.msra.gmra.mxu0 %v1067_v31  ;;  %818 = vmatmul.mubr.bf16.vlgmr.msra.gmra.mxu1 %v1076_v43 }
 0x24f   :  { %813 = vmatprep.mubr.bf16.mxu0 %v1069_v32  ;;  %821 = vmatprep.mubr.bf16.mxu1 %v1078_v44 }
 0x256   :  { %814 = vmatmul.mubr.bf16.gmra.mxu0 %v1073_v37  ;;  %822 = vmatmul.mubr.bf16.gmra.mxu1 %v1082_v47 }
 0x30e   :  { %v811_v14 = vpop.f32.mrf.mxu0  ;;  %v819_v17 = vpop.f32.mrf.mxu1 }
 0x30f   :  { %v443_v20 = vadd.f32 %v811_v14, %v1120_v27  ;;  %v451_v23 = vadd.f32 %v819_v17, %v1155_v51 }
 0x310   :  { %v378_v26 = vpop.f32.mrf.mxu0  ;;  %v410_v28 = vpop.f32.mrf.mxu1 }
 0x311   :  { %v459_v29 = vmul.f32 0.25, %v443_v20  ;;  %v467_v31 = vmul.f32 0.25, %v451_v23  ;;  %v441_v43 = vadd.f32 %v378_v26, %v1126_v30  ;;  %v449_v32 = vadd.f32 %v410_v28, %v1159_v53 }
 0x312   :  { %v812_v33 = vpop.f32.mrf.mxu0  ;;  %v820_v44 = vpop.f32.mrf.mxu1 }
 0x313   :  { %475 = vst [vmem:[#allocation10 + $0x10] sm:$0xff] %v459_v29  ;;  %483 = vst [vmem:[#allocation10 + $0x50] sm:$0xff] %v467_v31  ;;  %v457_v37 = vmul.f32 0.25, %v441_v43  ;;  %v465_v47 = vmul.f32 0.25, %v449_v32  ;;  %v444_v34 = vadd.f32 %v812_v33, %v1132_v21  ;;  %v452_v27 = vadd.f32 %v820_v44, %v1163_v55 }
 0x314   :  { %v381_v35 = vpop.f32.mrf.mxu0  ;;  %v413_v24 = vpop.f32.mrf.mxu1 }
 0x315   :  { %473 = vst [vmem:[#allocation10] sm:$0xff] %v457_v37  ;;  %481 = vst [vmem:[#allocation10 + $0x40] sm:$0xff] %v465_v47  ;;  %v460_v38 = vmul.f32 0.25, %v444_v34  ;;  %v468_v22 = vmul.f32 0.25, %v452_v27  ;;  %v442_v30 = vadd.f32 %v381_v35, %v1138_v36  ;;  %v450_v40 = vadd.f32 %v413_v24, %v1167_v63 }
 0x316   :  { %v815_v41 = vpop.f32.mrf.mxu0  ;;  %v823_v25 = vpop.f32.mrf.mxu1 }
 0x317   :  { %476 = vst [vmem:[#allocation10 + $0x18] sm:$0xff] %v460_v38  ;;  %484 = vst [vmem:[#allocation10 + $0x58] sm:$0xff] %v468_v22  ;;  %v458_v45 = vmul.f32 0.25, %v442_v30  ;;  %v466_v21 = vmul.f32 0.25, %v450_v40  ;;  %v447_v48 = vadd.f32 %v815_v41, %v1141_v39  ;;  %v455_v15 = vadd.f32 %v823_v25, %v1171_v5 }
 0x318   :  { %v394_v36 = vpop.f32.mrf.mxu0  ;;  %v426_v18 = vpop.f32.mrf.mxu1  ;;  %v333_v39 = vadd.f32 %v1179_v10, %v212_v50 }
 0x319   :  { %474 = vst [vmem:[#allocation10 + $0x8] sm:$0xff] %v458_v45  ;;  %482 = vst [vmem:[#allocation10 + $0x48] sm:$0xff] %v466_v21  ;;  %v463_v51 = vmul.f32 0.25, %v447_v48  ;;  %v471_v16 = vmul.f32 0.25, %v455_v15  ;;  %v445_v52 = vadd.f32 %v394_v36, %v1144_v42  ;;  %v453_v53 = vadd.f32 %v426_v18, %v1175_v8 }
 0x31a   :  { %v816_v19 = vpop.f32.mrf.mxu0  ;;  %v824_v54 = vpop.f32.mrf.mxu1 }
 0x31b   :  { %479 = vst [vmem:[#allocation10 + $0x30] sm:$0xff] %v463_v51  ;;  %487 = vst [vmem:[#allocation10 + $0x70] sm:$0xff] %v471_v16  ;;  %v461_v4 = vmul.f32 0.25, %v445_v52  ;;  %v469_v3 = vmul.f32 0.25, %v453_v53  ;;  %v448_v55 = vadd.f32 %v816_v19, %v1147_v46  ;;  %v456_v6 = vadd.f32 %v824_v54, %v1177_v59 }
 0x31c   :  { %v397_v42 = vpop.f32.mrf.mxu0  ;;  %v429_v56 = vpop.f32.mrf.mxu1 }
 0x31d   :  { %477 = vst [vmem:[#allocation10 + $0x20] sm:$0xff] %v461_v4  ;;  %485 = vst [vmem:[#allocation10 + $0x60] sm:$0xff] %v469_v3  ;;  %v464_v63 = vmul.f32 0.25, %v448_v55  ;;  %v472_v11 = vmul.f32 0.25, %v456_v6  ;;  %v446_v57 = vadd.f32 %v397_v42, %v1151_v49  ;;  %v454_v5 = vadd.f32 %v429_v56, %v333_v39 }
 0x31f   :  { %480 = vst [vmem:[#allocation10 + $0x38] sm:$0xff] %v464_v63  ;;  %488 = vst [vmem:[#allocation10 + $0x78] sm:$0xff] %v472_v11  ;;  %v462_v46 = vmul.f32 0.25, %v446_v57  ;;  %v470_v7 = vmul.f32 0.25, %v454_v5 }
 0x321   :  { %478 = vst [vmem:[#allocation10 + $0x28] sm:$0xff] %v462_v46  ;;  %486 = vst [vmem:[#allocation10 + $0x68] sm:$0xff] %v470_v7 }
 0x328   :  { %v521_v49 = vld [vmem:[%s520_s25] sm:$0x1]  ;;  %v665_v58 = vld [vmem:[%s642_s0 + $0x30] sm:$0x1] }
 0x329   :  { %v494_v8 = vld [vmem:[%s493_s26] sm:$0x1]  ;;  %v525_v12 = vmul.f32 %v665_v58, %v521_v49  ;;  %v659_v59 = vld [vmem:[%s636_s1 + $0x30] sm:$0x1] }
 0x32a   :  { %v534_v9 = vld [vmem:[%s533_s29] sm:$0x1]  ;;  %v668_v10 = vld [vmem:[%s645_s30 + $0x30] sm:$0x1]  ;;  %v498_v0 = vmul.f32 %v659_v59, %v494_v8 }
 0x32b   :  { %v508_v2 = vld [vmem:[%s507_s6] sm:$0x1]  ;;  %v662_v1 = vld [vmem:[%s639_s7 + $0x30] sm:$0x1]  ;;  %v526_v60 = vsel %vm499_vm0, %v525_v12, 0.0  ;;  %v538_v61 = vmul.f32 %v668_v10, %v534_v9 }
 0x32c   :  { %527 = vadd.xlane.f32.xlu1 %v526_v60  ;;  %v500_v62 = vsel %vm499_vm0, %v498_v0, 0.0  ;;  %v512_v13 = vmul.f32 %v662_v1, %v508_v2  ;;  %v560_v14 = vld [vmem:[%s559_s8] sm:$0x1]  ;;  %v674_v17 = vld [vmem:[%s651_s9 + $0x30] sm:$0x1] }
 0x32d   :  { %501 = vadd.xlane.f32.xlu0 %v500_v62  ;;  %v547_v20 = vld [vmem:[%s546_s10] sm:$0x1]  ;;  %v671_v23 = vld [vmem:[%s648_s2 + $0x30] sm:$0x1]  ;;  %v539_v26 = vsel %vm499_vm0, %v538_v61, 0.0  ;;  %v564_v28 = vmul.f32 %v674_v17, %v560_v14 }
 0x32e   :  { %v513_v29 = vsel %vm499_vm0, %v512_v13, 0.0  ;;  %v551_v31 = vmul.f32 %v671_v23, %v547_v20  ;;  %v586_v43 = vld [vmem:[%s585_s3] sm:$0x1]  ;;  %v680_v32 = vld [vmem:[%s657_s11 + $0x30] sm:$0x1] }
 0x32f   :  { %v573_v33 = vld [vmem:[%s572_s12] sm:$0x1]  ;;  %v677_v44 = vld [vmem:[%s654_s13 + $0x30] sm:$0x1]  ;;  %v565_v37 = vsel %vm499_vm0, %v564_v28, 0.0  ;;  %v590_v47 = vmul.f32 %v680_v32, %v586_v43 }
 0x330   :  { %540 = vadd.xlane.f32.xlu1 %v539_v26  ;;  %v552_v34 = vsel %vm499_vm0, %v551_v31, 0.0  ;;  %v577_v27 = vmul.f32 %v677_v44, %v573_v33 }
 0x331   :  { %514 = vadd.xlane.f32.xlu0 %v513_v29  ;;  %v591_v35 = vsel %vm499_vm0, %v590_v47, 0.0 }
 0x332   :  { %v578_v24 = vsel %vm499_vm0, %v577_v27, 0.0 }
 0x334   :  { %566 = vadd.xlane.f32.xlu1 %v565_v37 }
 0x335   :  { %553 = vadd.xlane.f32.xlu0 %v552_v34 }
 0x338   :  { %592 = vadd.xlane.f32.xlu1 %v591_v35 }
 0x339   :  { %579 = vadd.xlane.f32.xlu0 %v578_v24 }
 0x33a   :  { %924 = shalt.err (!%p921_p5)
}
 0x33b   :  { %614 = dma.vmem_to_hbm [thread:$0]  %s609_s15, 2048, %s1278_s4, [#allocation7], %s966_s27, %s966_s27, %s967_s28   ;;  %v489_v38 = vlaneseq  ;;  %vm601_vm9 = vcmask 57344  }
 0x33c   :  { %s970_s4 = smov [#allocation11]  }
 0x33d   :  { %v490_v22 = vand.u32 127, %v489_v38  ;;  %s621_s27 = sshll.u32 %s970_s4, 4  ;;  %s622_s27 = int_to_ptr.vmem [resolvable:$true] %s621_s27 }
 0x33e   :  { %s933_s28 = scalar_lea.vmem %s622_s27, 16  ;;  %s937_s19 = scalar_lea.vmem %s622_s27, 32 }
 0x33f   :  { %vm503_vm1 = vcmp.eq.s32.totalorder %v490_v22, 0  ;;  %vm516_vm2 = vcmp.eq.s32.totalorder %v490_v22, 1  ;;  %vm529_vm3 = vcmp.eq.s32.totalorder %v490_v22, 2  ;;  %vm542_vm4 = vcmp.eq.s32.totalorder %v490_v22, 3  ;;  %p934_p6 = scmp.ne.s32.totalorder %s622_s27, %s933_s28  ;;  %p938_p7 = scmp.lt.s32.totalorder %s622_s27, %s622_s27 }
 0x340   :  { %vm555_vm5 = vcmp.eq.s32.totalorder %v490_v22, 4  ;;  %vm568_vm6 = vcmp.eq.s32.totalorder %v490_v22, 5  ;;  %vm581_vm7 = vcmp.eq.s32.totalorder %v490_v22, 6  ;;  %vm594_vm8 = vcmp.eq.s32.totalorder %v490_v22, 7  ;;  %p939_p8 = scmp.lt.s32.totalorder %s937_s19, %s933_s28 }
 0x342   :  { %p940_p9 = por %p939_p8, %p938_p7 }
 0x344   :  { %p941_p10 = pnand %p940_p9, %p934_p6 }
 0x3b5   :  { %v528_v30 = vpop.xlane.xlu1 %527 }
 0x3b6   :  { %v502_v40 = vpop.xlane.xlu0 %501 }
 0x3b7   :  { %v504_v25 = vsel %vm503_vm1, %v502_v40, 0.0 }
 0x3b9   :  { %v541_v41 = vpop.xlane.xlu1 %540 }
 0x3ba   :  { %v515_v45 = vpop.xlane.xlu0 %514 }
 0x3bb   :  { %v517_v21 = vsel %vm516_vm2, %v515_v45, %v504_v25 }
 0x3bc   :  { %v530_v48 = vsel %vm529_vm3, %v528_v30, %v517_v21 }
 0x3bd   :  { %v567_v15 = vpop.xlane.xlu1 %566  ;;  %v543_v50 = vsel %vm542_vm4, %v541_v41, %v530_v48 }
 0x3be   :  { %v554_v36 = vpop.xlane.xlu0 %553 }
 0x3bf   :  { %v556_v18 = vsel %vm555_vm5, %v554_v36, %v543_v50 }
 0x3c0   :  { %v569_v16 = vsel %vm568_vm6, %v567_v15, %v556_v18 }
 0x3c1   :  { %v593_v51 = vpop.xlane.xlu1 %592 }
 0x3c2   :  { %v580_v52 = vpop.xlane.xlu0 %579 }
 0x3c3   :  { %v582_v53 = vsel %vm581_vm7, %v580_v52, %v569_v16 }
 0x3c4   :  { %v595_v39 = vsel %vm594_vm8, %v593_v51, %v582_v53 }
 0x3c5   :  { %v596_v19 = vsub.f32 0.0, %v595_v39 }
 0x3c7   :  { %v597_v54 = vmul.f32 1.442695, %v596_v19 }
 0x3c9   :  { %849 = vpow2.f32 %v597_v54 }
 0x3d6   :  { %v850_v4 = vpop.eup %849 }
 0x3d7   :  { %v599_v3 = vadd.f32 1.0, %v850_v4 }
 0x3d9   :  { %851 = vrcp.f32 %v599_v3 }
 0x3e6   :  { %v852_v55 = vpop.eup %851 }
 0x3e7   :  { %602 = vst.msk [vmem:[#allocation11] sm:$0x1] %vm601_vm9, %v852_v55 }
 0x3e8   :  { %944 = shalt.err (!%p941_p10)
}
 0x3e9   :  { %624 = dma.vmem_to_hbm [thread:$0]  %s622_s27, 16, %s1279_s5, [#allocation12]  }
 0x3ea   :  { %959 = dma.done.wait [#allocation7], 2048  }
 0x3eb   :  { %960 = vsyncadd [#allocation7], 4294965248 }
 0x3ec   :  { %961 = dma.done.wait [#allocation12], 16  }
 0x3ed   :  { %962 = vsyncadd [#allocation12], 4294967280 }
 0x3ee   :  { %631 = vsyncpa [#allocation6], 1 }
 0x3ef   :  { %632 = vsyncpa [#allocation9], 1 }
 0x3f0   :  { %633 = vsyncpa [#allocation7], 1 }
 0x3f1   :  { %634 = vsyncpa [#allocation12], 1 }

</bundles_post_ra>
